<compile_context>
chip_gen: v5e
topology: v5e:2x2
jax: 0.10.0
libtpu: 0.0.40
codegen_flags: <defaults>
</compile_context>

<pallas_src>
import jax
import jax.numpy as jnp
from jax.experimental import pallas as pl
from jax.experimental.pallas import tpu as pltpu


def qfunc_kernel(x_ref, w1_ref, b1_ref, w2_ref, b2_ref, w3_ref, b3_ref, o_ref):
    # x_ref: (F, TM) feature-major block; the batch rides the 128-lane axis.
    # Layer 1: (H1, F) @ (F, TM) on the MXU, f32 accumulation.
    h1 = jnp.dot(w1_ref[...], x_ref[...], preferred_element_type=jnp.float32)
    h1 = jnp.maximum(h1 + b1_ref[...], 0.0)            # bias + ReLU in f32 (VPU)

    # Layer 2: (H2, H1) @ (H1, TM), f32 accumulation.  Cast operand to the
    # weight dtype (no-op for f32; keeps the bf16 MXU path when enabled).
    h2 = jnp.dot(w2_ref[...], h1.astype(w2_ref.dtype),
                 preferred_element_type=jnp.float32)
    h2 = jnp.maximum(h2 + b2_ref[...], 0.0)             # bias + ReLU in f32 (VPU)

    # Layer 3 (out_features == 1): VPU multiply + sublane (XLU) reduction
    # instead of an M=1 MXU matmul; result is a lane-dense (1, TM) row, so the
    # store below is an unmasked, full-lane vst.
    q = jnp.sum(h2 * w3_ref[...], axis=0, keepdims=True) + b3_ref[...]
    o_ref[...] = q.astype(o_ref.dtype)


def mlp_q_forward_packed(x_fm, kparams, *, tile_m=1024, compute_dtype=jnp.float32):
    """Pallas path.  x_fm is feature-major: (obs_dim + act_dim, B)."""
    assert tile_m % 128 == 0, "tile_m must be a multiple of 128 (lane tiling)"
    w1t, b1c, w2t, b2c, w3c, b3s = kparams

    F, B = x_fm.shape
    n_blocks = pl.cdiv(B, tile_m)
    b_pad = n_blocks * tile_m

    # Matmul operands in compute_dtype; biases / final reduce stay f32.
    x_fm = x_fm.astype(compute_dtype)
    w1t = w1t.astype(compute_dtype)
    w2t = w2t.astype(compute_dtype)

    if b_pad != B:
        x_fm = jnp.pad(x_fm, ((0, 0), (0, b_pad - B)))   # zero columns, trimmed later

    def const_spec(arr):
        # Full-array block with a constant index_map: fetched once, then
        # VMEM-resident across grid steps (Pallas skips the repeat DMA).
        return pl.BlockSpec(arr.shape, lambda i: (0, 0))

    h1_dim = w1t.shape[0]
    h2_dim = w2t.shape[0]
    flops = 2 * b_pad * (F * h1_dim + h1_dim * h2_dim + h2_dim)
    weight_bytes = sum(int(a.size) * a.dtype.itemsize
                       for a in (w1t, b1c, w2t, b2c, w3c, b3s))
    bytes_accessed = (int(x_fm.size) * x_fm.dtype.itemsize   # input stream
                      + b_pad * 4                             # output row
                      + weight_bytes)

    out = pl.pallas_call(
        qfunc_kernel,
        out_shape=jax.ShapeDtypeStruct((1, b_pad), jnp.float32),
        grid=(n_blocks,),
        in_specs=[
            # Batch-tiled, lane-dense input block; streams through VMEM with
            # software pipelining.
            pl.BlockSpec((F, tile_m), lambda i: (0, i)),
            const_spec(w1t), const_spec(b1c),
            const_spec(w2t), const_spec(b2c),
            const_spec(w3c), const_spec(b3s),
        ],
        # Lane-dense output block -> unmasked stores.
        out_specs=pl.BlockSpec((1, tile_m), lambda i: (0, i)),
        compiler_params=pltpu.CompilerParams(
            dimension_semantics=("parallel",)),    # megacore split on v7x
        cost_estimate=pl.CostEstimate(flops=int(flops), transcendentals=0,
                                      bytes_accessed=int(bytes_accessed)),
    )(x_fm, w1t, b1c, w2t, b2c, w3c, b3s)

    return out[0, :B]


def mlp_q_forward(obs, act, params, *, tile_m=1024,
                  compute_dtype=jnp.float32, force_pallas=False):
    """MLPQFunction.forward(obs, act).

    Batches smaller than 2*tile_m go through the fused XLA path (the Pallas
    call would be pure launch/pipeline-fill overhead and would leave one v7x
    TensorCore idle); larger batches use the Pallas kernel.
    """
    B = obs.shape[0]
    if not force_pallas and B < 2 * tile_m:
        return reference_forward(obs, act, params)
    # TODO(synk): in production the data producer / replay buffer should emit
    # obs||act directly in feature-major (F, B) layout instead of paying this
    # per-call concat+transpose HBM pass.
    x_fm = pack_inputs(obs, act)
    return mlp_q_forward_packed(x_fm, prepare_params(params),
                                tile_m=tile_m, compute_dtype=compute_dtype)


def pack_inputs(obs, act):
    """One-time pack to feature-major: (obs_dim + act_dim, B)."""
    return jnp.concatenate([obs, act], axis=-1).T


def init_params(key, sizes):
    """Deterministic xavier_normal_(gain=0.01) weights, zero biases.

    Weights stored as (in, out) so the row-major reference computes x @ W + b,
    matching PyTorch's x @ weight.T + bias with weight of shape (out, in).
    """
    params = []
    for j in range(len(sizes) - 1):
        fan_in, fan_out = sizes[j], sizes[j + 1]
        key, sub = jax.random.split(key)
        std = 0.01 * jnp.sqrt(2.0 / (fan_in + fan_out))
        w = std * jax.random.normal(sub, (fan_in, fan_out), dtype=jnp.float32)
        b = jnp.zeros((1, fan_out), dtype=jnp.float32)
        params.append((w, b))
    return params


def prepare_params(params):
    """One-time repack into feature-major kernel form.

    W^T become matmul LHS operands, biases become (out, 1) columns that
    broadcast along the lane (batch) axis, W3 stays a (H2, 1) column for the
    final VPU-multiply + sublane reduce.
    """
    (w1, b1), (w2, b2), (w3, b3) = params
    return (jnp.transpose(w1),           # (H1, F)
            jnp.reshape(b1, (-1, 1)),    # (H1, 1)
            jnp.transpose(w2),           # (H2, H1)
            jnp.reshape(b2, (-1, 1)),    # (H2, 1)
            w3,                          # (H2, 1)
            jnp.reshape(b3, (1, 1)))     # (1, 1)


def reference_forward(obs, act, params):
    """Fused XLA reference (also the small-batch dispatch target)."""
    x = jnp.concatenate([obs, act], axis=-1)
    (w1, b1), (w2, b2), (w3, b3) = params
    h1 = jnp.maximum(x @ w1 + b1, 0.0)
    h2 = jnp.maximum(h1 @ w2 + b2, 0.0)
    return jnp.squeeze(h2 @ w3 + b3, -1)


if __name__ == "__main__":
    # Small shapes consistent with the module; B=300 with tile_m=128 exercises
    # batch tiling (3 grid steps), software pipelining, the parallel grid axis
    # and ragged-batch padding.  Production default is tile_m=1024.
    B, obs_dim, act_dim = 300, 12, 4
    hidden_sizes = [32, 32]
    hidden_sizes[0] += act_dim                         # module mutates this in __init__
    sizes = [obs_dim + act_dim] + hidden_sizes + [1]   # [16, 36, 32, 1]

    key = jax.random.PRNGKey(0)
    k_obs, k_act, k_params = jax.random.split(key, 3)
    obs = jax.random.normal(k_obs, (B, obs_dim), dtype=jnp.float32)
    act = jax.random.normal(k_act, (B, act_dim), dtype=jnp.float32)

    params = init_params(k_params, sizes)
    kparams = prepare_params(params)                   # one-time repack
    x_fm = pack_inputs(obs, act)                       # producer-side in production

    q = mlp_q_forward_packed(x_fm, kparams, tile_m=128)   # force the Pallas path
    q = jax.block_until_ready(q)

    q_ref = reference_forward(obs, act, params)
    assert q.shape == (B,)
    err = float(jnp.max(jnp.abs(q - q_ref)))
    scale = float(jnp.max(jnp.abs(q_ref)))
    assert err <= 1e-4 * scale + 1e-7, (err, scale)

    # Dispatcher sanity: a small batch routes to the fused XLA path.
    q_small = jax.block_until_ready(mlp_q_forward(obs, act, params))
    assert q_small.shape == (B,)

    print("KERNEL_OK")
</pallas_src>

<mosaic_0001>
module attributes {stable_mosaic.version = 11 : i64} {
  func.func @qfunc_kernel(%arg0: i32, %arg1: memref<16x128xf32, #tpu.memory_space<vmem>>, %arg2: memref<36x16xf32, #tpu.memory_space<vmem>>, %arg3: memref<36x1xf32, #tpu.memory_space<vmem>>, %arg4: memref<32x36xf32, #tpu.memory_space<vmem>>, %arg5: memref<32x1xf32, #tpu.memory_space<vmem>>, %arg6: memref<32x1xf32, #tpu.memory_space<vmem>>, %arg7: memref<1x1xf32, #tpu.memory_space<vmem>>, %arg8: memref<1x128xf32, #tpu.memory_space<vmem>>) attributes {dimension_semantics = [#tpu.dimension_semantics<parallel>], iteration_bounds = array<i64: 3>, scalar_prefetch = 0 : i64, scratch_operands = 0 : i64, tpu.core_type = #tpu.core_type<tc>, window_params = [{transform_indices = @transform_0, window_bounds = array<i64: 16, 128>}, {pipeline_mode = #tpu.pipeline_mode<synchronous>, transform_indices = @transform_1, window_bounds = array<i64: 36, 16>}, {pipeline_mode = #tpu.pipeline_mode<synchronous>, transform_indices = @transform_2, window_bounds = array<i64: 36, 1>}, {pipeline_mode = #tpu.pipeline_mode<synchronous>, transform_indices = @transform_3, window_bounds = array<i64: 32, 36>}, {pipeline_mode = #tpu.pipeline_mode<synchronous>, transform_indices = @transform_4, window_bounds = array<i64: 32, 1>}, {pipeline_mode = #tpu.pipeline_mode<synchronous>, transform_indices = @transform_5, window_bounds = array<i64: 32, 1>}, {pipeline_mode = #tpu.pipeline_mode<synchronous>, transform_indices = @transform_6, window_bounds = array<i64: 1, 1>}, {transform_indices = @transform_7, window_bounds = array<i64: 1, 128>}]} {
    %c0 = arith.constant 0 : index
    %c0_0 = arith.constant 0 : index
    %0 = vector.load %arg2[%c0, %c0_0] : memref<36x16xf32, #tpu.memory_space<vmem>>, vector<36x16xf32>
    %c0_1 = arith.constant 0 : index
    %c0_2 = arith.constant 0 : index
    %1 = vector.load %arg1[%c0_1, %c0_2] : memref<16x128xf32, #tpu.memory_space<vmem>>, vector<16x128xf32>
    %cst = arith.constant dense<0.000000e+00> : vector<36x128xf32>
    %2 = tpu.matmul %0, %1, %cst {dimension_numbers = #tpu.dot_dimension_numbers<[1], [0], [0], [1], [0, 0, 1, 1], [], []>} : vector<36x16xf32>, vector<16x128xf32>, vector<36x128xf32> -> vector<36x128xf32>
    %c0_3 = arith.constant 0 : index
    %c0_4 = arith.constant 0 : index
    %3 = vector.load %arg3[%c0_3, %c0_4] : memref<36x1xf32, #tpu.memory_space<vmem>>, vector<36x1xf32>
    %4 = vector.broadcast %3 : vector<36x1xf32> to vector<36x128xf32>
    %5 = arith.addf %2, %4 : vector<36x128xf32>
    %cst_5 = arith.constant 0.000000e+00 : f32
    %6 = vector.broadcast %cst_5 : f32 to vector<36x128xf32>
    %7 = arith.maximumf %5, %6 : vector<36x128xf32>
    %c0_6 = arith.constant 0 : index
    %c0_7 = arith.constant 0 : index
    %8 = vector.load %arg4[%c0_6, %c0_7] : memref<32x36xf32, #tpu.memory_space<vmem>>, vector<32x36xf32>
    %cst_8 = arith.constant dense<0.000000e+00> : vector<32x128xf32>
    %9 = tpu.matmul %8, %7, %cst_8 {dimension_numbers = #tpu.dot_dimension_numbers<[1], [0], [0], [1], [0, 0, 1, 1], [], []>} : vector<32x36xf32>, vector<36x128xf32>, vector<32x128xf32> -> vector<32x128xf32>
    %c0_9 = arith.constant 0 : index
    %c0_10 = arith.constant 0 : index
    %10 = vector.load %arg5[%c0_9, %c0_10] : memref<32x1xf32, #tpu.memory_space<vmem>>, vector<32x1xf32>
    %11 = vector.broadcast %10 : vector<32x1xf32> to vector<32x128xf32>
    %12 = arith.addf %9, %11 : vector<32x128xf32>
    %cst_11 = arith.constant 0.000000e+00 : f32
    %13 = vector.broadcast %cst_11 : f32 to vector<32x128xf32>
    %14 = arith.maximumf %12, %13 : vector<32x128xf32>
    %c0_12 = arith.constant 0 : index
    %c0_13 = arith.constant 0 : index
    %15 = vector.load %arg6[%c0_12, %c0_13] : memref<32x1xf32, #tpu.memory_space<vmem>>, vector<32x1xf32>
    %16 = vector.broadcast %15 : vector<32x1xf32> to vector<32x128xf32>
    %17 = arith.mulf %14, %16 : vector<32x128xf32>
    %cst_14 = arith.constant dense<0.000000e+00> : vector<128xf32>
    %18 = vector.multi_reduction <add>, %17, %cst_14 [0] : vector<32x128xf32> to vector<128xf32>
    %19 = vector.shape_cast %18 : vector<128xf32> to vector<1x128xf32>
    %c0_15 = arith.constant 0 : index
    %c0_16 = arith.constant 0 : index
    %20 = vector.load %arg7[%c0_15, %c0_16] : memref<1x1xf32, #tpu.memory_space<vmem>>, vector<1x1xf32>
    %21 = vector.broadcast %20 : vector<1x1xf32> to vector<1x128xf32>
    %22 = arith.addf %19, %21 : vector<1x128xf32>
    %c0_17 = arith.constant 0 : index
    %c0_18 = arith.constant 0 : index
    %23 = vector.load %arg8[%c0_17, %c0_18] : memref<1x128xf32, #tpu.memory_space<vmem>>, vector<1x128xf32>
    tpu.vector_store %arg8[%c0_17, %c0_18], %22 {strides = array<i32>} : memref<1x128xf32, #tpu.memory_space<vmem>>, vector<1x128xf32>,
    return
  }
  func.func @transform_0(%arg0: i32) -> (i32, i32) {
    %c0_i32 = arith.constant 0 : i32
    %c0_i32_0 = arith.constant 0 : i32
    return %c0_i32, %arg0 : i32, i32
  }
  func.func @transform_1(%arg0: i32) -> (i32, i32) {
    %c0_i32 = arith.constant 0 : i32
    %c0_i32_0 = arith.constant 0 : i32
    %c0_i32_1 = arith.constant 0 : i32
    return %c0_i32, %c0_i32_0 : i32, i32
  }
  func.func @transform_2(%arg0: i32) -> (i32, i32) {
    %c0_i32 = arith.constant 0 : i32
    %c0_i32_0 = arith.constant 0 : i32
    %c0_i32_1 = arith.constant 0 : i32
    return %c0_i32, %c0_i32_0 : i32, i32
  }
  func.func @transform_3(%arg0: i32) -> (i32, i32) {
    %c0_i32 = arith.constant 0 : i32
    %c0_i32_0 = arith.constant 0 : i32
    %c0_i32_1 = arith.constant 0 : i32
    return %c0_i32, %c0_i32_0 : i32, i32
  }
  func.func @transform_4(%arg0: i32) -> (i32, i32) {
    %c0_i32 = arith.constant 0 : i32
    %c0_i32_0 = arith.constant 0 : i32
    %c0_i32_1 = arith.constant 0 : i32
    return %c0_i32, %c0_i32_0 : i32, i32
  }
  func.func @transform_5(%arg0: i32) -> (i32, i32) {
    %c0_i32 = arith.constant 0 : i32
    %c0_i32_0 = arith.constant 0 : i32
    %c0_i32_1 = arith.constant 0 : i32
    return %c0_i32, %c0_i32_0 : i32, i32
  }
  func.func @transform_6(%arg0: i32) -> (i32, i32) {
    %c0_i32 = arith.constant 0 : i32
    %c0_i32_0 = arith.constant 0 : i32
    %c0_i32_1 = arith.constant 0 : i32
    return %c0_i32, %c0_i32_0 : i32, i32
  }
  func.func @transform_7(%arg0: i32) -> (i32, i32) {
    %c0_i32 = arith.constant 0 : i32
    %c0_i32_0 = arith.constant 0 : i32
    return %c0_i32, %arg0 : i32, i32
  }
}

</mosaic_0001>

<bundles_post_ra>
// kernel: tpu_custom_call.1
= control target key start
LH: loop header
LB: loop body
LE: loop exit
PB: predicated region body
PF: predicated region fallthrough
CT: control target
= control target key end

     0   :  { %s945_s0 = inlined_call_operand.vmem [shape: f32[16,384], index: 0, kind: input, shape index: {}]   ;;  %s946_s1 = inlined_call_operand.vmem [shape: f32[36,16], index: 1, kind: input, shape index: {}]   ;;  %s947_s2 = inlined_call_operand.vmem [shape: f32[36,1], index: 2, kind: input, shape index: {}]   ;;  %s948_s3 = inlined_call_operand.vmem [shape: f32[32,36], index: 3, kind: input, shape index: {}]   ;;  %s949_s4 = inlined_call_operand.vmem [shape: f32[32,1], index: 4, kind: input, shape index: {}]   ;;  %s950_s5 = inlined_call_operand.vmem [shape: f32[32,1], index: 5, kind: input, shape index: {}]   ;;  %s951_s6 = inlined_call_operand.<no memory space> [shape: f32[1,1], index: 6, kind: input, shape index: {}]   ;;  %s952_s7 = inlined_call_operand.hbm [shape: f32[1,384], index: 7, kind: output, shape index: {}]  }
   0x1   :  { %v12_v0 = vstv %s951_s6 }
   0x2   :  { %13 = vst [vmem:[#allocation2] sm:$0x1] %v12_v0 }
   0x3   :  { %14 = vsyncpa [#allocation5], 0 }
   0x4   :  { %16 = vsyncpa [#allocation5 + $0x1], 0  ;;  %s782_s26 = smov 0   ;;  %s784_s27 = smov 0  }
   0x5   :  { %s786_s28 = smov 0   ;;  %s788_s29 = smov 0  }
   0x6 LB: > { %s604_s6 = sadd.s32 4294967295, %s736_s29   ;;  %s605_s30 = sadd.s32 4294967294, %s736_s29   ;;  %s736_s29 = sphi %s788_s29, %s958_s29   ;;  %s732_s28 = sphi %s786_s28, %s957_s28   ;;  %s728_s27 = sphi %s784_s27, %s956_s27   ;;  %s724_s26 = sphi %s782_s26, %s955_s26  }
   0x7   : > { %s805_s8 = sadd.s32 1, %s736_s29   ;;  %s29_s9 = sadd.s32 1, %s732_s28 }
   0x8   : > { %s26_s10 = ssub.s32 %s736_s29, %s805_s8  ;;  %p36_p0 = scmp.ne.s32.totalorder %s732_s28, %s728_s27 }
   0x9   : > { %p27_p1 = scmp.eq.s32.totalorder %s26_s10, 0  ;;  %p37_p2 = scmp.eq.s32.totalorder %s736_s29, 0 }
   0xa   : > { %p192_p3 = scmp.eq.s32.totalorder %s604_s6, 2  ;;  %p197_p4 = scmp.ne.s32.totalorder %s728_s27, %s724_s26 }
   0xb   : > { %s818_s11 = scalar_select %p27_p1, %s732_s28, %s29_s9  }
   0xc   : > { %p38_p5 = por %p37_p2, %p36_p0  ;;  %p820_p6 = por %p192_p3, %p36_p0 }
   0xd   : > { %p198_p7 = scmp.eq.s32.totalorder %s605_s30, 2  ;;  %p607_p9 = scmp.ge.s32.totalorder %s736_s29, 3 }
   0xf   : > { %p824_p8 = por %p198_p7, %p197_p4  ;;  %232 = sbr.rel (%p607_p9) target bundleno = 26 (0x1a), region = 40 }
  0x14   : > { %235 = sbr.rel (!%p38_p5) target bundleno = 26 (0x1a), region = 44  ;;  %s237_s14 = sand.u32 (%p38_p5), 1, %s732_s28  }
  0x15   : > { %s609_s15 = sshll.u32 (%p38_p5), %s736_s29, 3  ;;  %s608_s16 = sshll.u32 (%p38_p5), %s237_s14, 4 }
  0x16   : > { %s241_s19 = scalar_lea.vmem (%p38_p5), %s945_s0, %s609_s15  ;;  %s239_s20 = scalar_lea.vmem (%p38_p5), [#allocation3], %s608_s16 }
  0x17   : > { %v272_v1 = vld [vmem:[%s241_s19] sm:$0xff] (%p38_p5)  ;;  %v274_v2 = vld [vmem:[%s241_s19 + $0x18] sm:$0xff] (%p38_p5) }
  0x18   : > { %273 = vst [vmem:[%s239_s20] sm:$0xff] (%p38_p5), %v272_v1 }
  0x19   : > { %275 = vst [vmem:[%s239_s20 + $0x8] sm:$0xff] %v274_v2 }
  0x1a PF: > { %p610_p10 = scmp.ge.s32.totalorder %s736_s29, 1  ;;  %p280_p11 = scmp.lt.s32.totalorder %s736_s29, 4 }
  0x1c   : > { %p281_p12 = pnand %p610_p10, %p280_p11 }
  0x1d   : > { %s843_s25 = sand.u32 (!%p281_p12), 1, %s728_s27   ;;  %s540_s10 = scalar_lea.hbm (!%p281_p12), %s952_s7, %s604_s6 }
  0x1e   : > { %284 = sbr.rel (%p281_p12) target bundleno = 360 (0x168), region = 82  ;;  %s611_s30 = sshll.u32 (!%p281_p12), %s843_s25, 4 }
  0x1f   : > { %s289_s9 = scalar_lea.vmem (!%p281_p12), [#allocation3], %s611_s30  ;;  %s316_s14 = scalar_lea.vmem (!%p281_p12), [#allocation4], %s843_s25 }
  0x20   : > { %s542_s15 = sshll.u32 (!%p281_p12), %s316_s14, 4  ;;  %s544_s16 = sshll.u32 (!%p281_p12), %s540_s10, 4  ;;  %s543_s15 = int_to_ptr.vmem [resolvable:$true] %s542_s15  ;;  %s545_s16 = int_to_ptr.hbm [resolvable:$true] %s544_s16 }
  0x21   : > { %s532_s17 = scalar_lea.sflag (!%p281_p12), [#allocation5], %s843_s25  ;;  %s688_s18 = sshra.s32 (!%p281_p12), %s545_s16, 4  ;;  %s689_s18 = int_to_ptr.hbm [resolvable:$true] %s688_s18 }
  0x22   : > { %s690_s19 = scalar_lea.hbm (!%p281_p12), %s689_s18, 1  ;;  %s694_s21 = scalar_lea.hbm (!%p281_p12), %s952_s7, 3 }
  0x23   : > { %v328_v3 = vld [vmem:[%s947_s2 + $0x20] sm:$0xf]  ;;  %v326_v4 = vld [vmem:[%s947_s2 + $0x10] sm:$0xff]  ;;  %v738_v5 = vmov 0   ;;  %vm354_vm0 = vcmask 130048   ;;  %v320_v9 = vld [vmem:[%s946_s1 + $0x18] sm:$0xff]  ;;  %p691_p13 = scmp.ne.s32.totalorder %s689_s18, %s690_s19  ;;  %p695_p2 = scmp.lt.s32.totalorder %s689_s18, %s952_s7 }
  0x24   : > { %672 = vset.pattern.permute.xlu1 %v738_v5  ;;  %671 = vset.pattern.permute.xlu0 %v738_v5  ;;  %v323_v6 = vld [vmem:[%s289_s9 + $0x8] sm:$0xff]  ;;  %v322_v7 = vld [vmem:[%s289_s9] sm:$0xff]  ;;  %vm448_vm1 = vcmask 1043456   ;;  %vm435_vm2 = vcmask 293888   ;;  %p696_p3 = scmp.lt.s32.totalorder %s694_s21, %s690_s19 }
  0x25   : > { %351 = vperm.xlu0 %671, %v328_v3   ;;  %341 = vperm.xlu1 %672, %v326_v4   ;;  %v317_v8 = vld [vmem:[%s946_s1] sm:$0xff]  ;;  %v327_v11 = vld [vmem:[%s947_s2 + $0x18] sm:$0xff]  ;;  %v325_v12 = vld [vmem:[%s947_s2 + $0x8] sm:$0xff]  ;;  %p692_p0 = pnand %p691_p13, %p820_p6 }
  0x26   : > { %673 = vset.pattern.permute.xlu2 %v738_v5  ;;  %384 = vmatpush.msra.mxu0 %v323_v6  ;;  %v324_v10 = vld [vmem:[%s947_s2] sm:$0xff]  ;;  %v318_v13 = vld [vmem:[%s946_s1 + $0x8] sm:$0xff]  ;;  %v413_v17 = vld [vmem:[%s949_s4 + $0x10] sm:$0xff]  ;;  %p697_p4 = por %p696_p3, %p695_p2 }
  0x27   : > { %624 = vmatpush.msra.mxu2 %v323_v6  ;;  %331 = vperm.xlu2 %673, %v324_v10   ;;  %v321_v14 = vld [vmem:[%s946_s1 + $0x20] sm:$0xf]  ;;  %v412_v16 = vld [vmem:[%s949_s4 + $0x8] sm:$0xff]  ;;  %v319_v18 = vld [vmem:[%s946_s1 + $0x10] sm:$0xff]  ;;  %p693_p1 = pneg %p692_p0 }
  0x28   : > { %385 = vmatpush.msra.mxu0 %v322_v7  ;;  %v411_v15 = vld [vmem:[%s949_s4] sm:$0xff]  ;;  %v414_v19 = vld [vmem:[%s949_s4 + $0x18] sm:$0xff]  ;;  %v486_v21 = vld [vmem:[%s950_s5 + $0x8] sm:$0xff] }
  0x29   : > { %625 = vmatpush.msra.mxu2 %v322_v7  ;;  %612 = vmatmul.msk.f32.vlgmr.msra.gmra.mxu0 %vm354_vm0, %v317_v8  ;;  %v485_v20 = vld [vmem:[%s950_s5] sm:$0xff]  ;;  %v487_v22 = vld [vmem:[%s950_s5 + $0x10] sm:$0xff]  ;;  %v488_v23 = vld [vmem:[%s950_s5 + $0x18] sm:$0xff]  ;;  %p698_p5 = pnand %p697_p4, %p693_p1 }
  0x2a   : > { %615 = vmatmul.msk.f32.vlgmr.msra.gmra.mxu2 %vm354_vm0, %v320_v9  ;;  %v522_v24 = vld [vmem:[#allocation2] sm:$0x1]  ;;  %v409_v46 = vld [vmem:[%s948_s3 + $0x10] sm:$0xff]  ;;  %v408_v47 = vld [vmem:[%s948_s3 + $0x8] sm:$0xff] }
  0x2b   : > { %v407_v45 = vld [vmem:[%s948_s3] sm:$0xff]  ;;  %v410_v48 = vld [vmem:[%s948_s3 + $0x18] sm:$0xff] }
  0x2d   : > { %346 = vperm.xlu0 %671, %v327_v11   ;;  %336 = vperm.xlu1 %672, %v325_v12  }
  0x2f   : > { %417 = vperm.xlu2 %673, %v411_v15  }
  0x31   : > { %613 = vmatmul.msk.f32.gmra.mxu0 %vm354_vm0, %v318_v13 }
  0x32   : > { %616 = vmatmul.msk.f32.gmra.mxu2 %vm354_vm0, %v321_v14 }
  0x35   : > { %422 = vperm.xlu0 %671, %v412_v16   ;;  %427 = vperm.xlu1 %672, %v413_v17  }
  0x37   : > { %432 = vperm.xlu2 %673, %v414_v19  }
  0x39   : > { %614 = vmatmul.msk.f32.gmra.mxu0 %vm354_vm0, %v319_v18 }
  0x3d   : > { %491 = vperm.xlu0 %671, %v485_v20   ;;  %496 = vperm.xlu1 %672, %v486_v21  }
  0x3f   : > { %501 = vperm.xlu2 %673, %v487_v22  }
  0x45   : > { %506 = vperm.xlu0 %671, %v488_v23   ;;  %525 = vperm.xlu1 %672, %v522_v24  }
  0x81   : > { %v332_v40 = vpop.permute.xlu2 %331 }
  0x89   : > { %v418_v49 = vpop.permute.xlu2 %417 }
  0x91   : > { %v433_v54 = vpop.permute.xlu2 %432 }
  0x97   : > { %v352_v26 = vpop.permute.xlu0 %351  ;;  %v342_v28 = vpop.permute.xlu1 %341 }
  0x99   : > { %v502_v5 = vpop.permute.xlu2 %501 }
  0x9f   : > { %v347_v30 = vpop.permute.xlu0 %346  ;;  %v337_v36 = vpop.permute.xlu1 %336 }
  0xa6   : > { %v387_v25 = vpop.f32.mrf.mxu0 }
  0xa7   : > { %v388_v41 = vadd.f32 %v387_v25, %v332_v40  ;;  %v423_v50 = vpop.permute.xlu0 %422  ;;  %v428_v52 = vpop.permute.xlu1 %427 }
  0xa9   : > { %v402_v44 = vmax.f32 %v388_v41, 0.0 }
  0xad   : > { %v396_v27 = vpop.f32.mrf.mxu2 }
  0xae   : > { %v390_v29 = vpop.f32.mrf.mxu0  ;;  %v397_v32 = vadd.f32 %v396_v27, %v347_v30 }
  0xaf   : > { %v391_v39 = vadd.f32 %v390_v29, %v337_v36  ;;  %v492_v56 = vpop.permute.xlu0 %491  ;;  %v497_v62 = vpop.permute.xlu1 %496 }
  0xb0   : > { %v405_v38 = vmax.f32 %v397_v32, 0.0 }
  0xb1   : > { %v403_v43 = vmax.f32 %v391_v39, 0.0 }
  0xb5   : > { %v399_v31 = vpop.f32.mrf.mxu2 }
  0xb6   : > { %v400_v33 = vadd.f32 %v399_v31, %v352_v26  ;;  %v393_v35 = vpop.f32.mrf.mxu0 }
  0xb7   : > { %v394_v37 = vadd.f32 %v393_v35, %v342_v28  ;;  %v507_v8 = vpop.permute.xlu0 %506  ;;  %v526_v16 = vpop.permute.xlu1 %525 }
  0xb8   : > { %v406_v34 = vmax.f32 %v400_v33, 0.0  ;;  %v528_v18 = vperm.slane %v526_v16, 0 }
  0xb9   : > { %v404_v42 = vmax.f32 %v394_v37, 0.0 }
  0xba   : > { %617 = vmatpush.msk.msra.mxu1 %vm448_vm1, %v406_v34  ;;  %626 = vmatpush.msk.msra.mxu3 %vm448_vm1, %v406_v34 }
  0xbc   : > { %464 = vmatpush.msra.mxu1 %v405_v38  ;;  %627 = vmatpush.msra.mxu3 %v405_v38 }
  0xbe   : > { %465 = vmatpush.msra.mxu1 %v404_v42  ;;  %628 = vmatpush.msra.mxu3 %v404_v42 }
  0xc0   : > { %466 = vmatpush.msra.mxu1 %v403_v43  ;;  %629 = vmatpush.msra.mxu3 %v403_v43 }
  0xc2   : > { %467 = vmatpush.msra.mxu1 %v402_v44  ;;  %630 = vmatpush.msra.mxu3 %v402_v44 }
  0xc3   : > { %618 = vmatmul.msk.f32.vlgmr.msra.gmra.mxu1 %vm435_vm2, %v407_v45  ;;  %620 = vmatmul.msk.f32.vlgmr.msra.gmra.mxu3 %vm435_vm2, %v409_v46 }
  0xcb   : > { %619 = vmatmul.msk.f32.gmra.mxu1 %vm435_vm2, %v408_v47  ;;  %621 = vmatmul.msk.f32.gmra.mxu3 %vm435_vm2, %v410_v48 }
 0x140   : > { %v469_v51 = vpop.f32.mrf.mxu1 }
 0x141   : > { %v470_v53 = vadd.f32 %v469_v51, %v418_v49 }
 0x143   : > { %v481_v58 = vmax.f32 %v470_v53, 0.0 }
 0x145   : > { %v509_v63 = vmul.f32 %v492_v56, %v481_v58 }
 0x146   : > { %v475_v55 = vpop.f32.mrf.mxu3 }
 0x147   : > { %v476_v59 = vadd.f32 %v475_v55, %v428_v52 }
 0x148   : > { %v472_v57 = vpop.f32.mrf.mxu1 }
 0x149   : > { %v473_v60 = vadd.f32 %v472_v57, %v423_v50  ;;  %v483_v0 = vmax.f32 %v476_v59, 0.0 }
 0x14b   : > { %v482_v61 = vmax.f32 %v473_v60, 0.0  ;;  %v511_v6 = vmul.f32 %v502_v5, %v483_v0 }
 0x14d   : > { %v510_v1 = vmul.f32 %v497_v62, %v482_v61 }
 0x14e   : > { %v478_v2 = vpop.f32.mrf.mxu3 }
 0x14f   : > { %v513_v3 = vadd.f32 %v510_v1, %v509_v63  ;;  %v479_v4 = vadd.f32 %v478_v2, %v433_v54 }
 0x151   : > { %v484_v7 = vmax.f32 %v479_v4, 0.0  ;;  %v514_v10 = vadd.f32 %v513_v3, %v511_v6 }
 0x153   : > { %v512_v9 = vmul.f32 %v507_v8, %v484_v7 }
 0x155   : > { %v515_v11 = vadd.f32 %v514_v10, %v512_v9 }
 0x157   : > { %v516_v12 = vrot.slane %v515_v11, 4 }
 0x159   : > { %v517_v13 = vadd.f32 %v516_v12, %v515_v11 }
 0x15b   : > { %v518_v14 = vrot.slane %v517_v13, 2 }
 0x15d   : > { %v519_v15 = vadd.f32 %v518_v14, %v517_v13 }
 0x15f   : > { %v520_v17 = vrot.slane %v519_v15, 1 }
 0x161   : > { %v521_v19 = vadd.f32 %v520_v17, %v519_v15 }
 0x163   : > { %v529_v20 = vadd.f32 %v528_v18, %v521_v19 }
 0x165   : > { %530 = vst [vmem:[%s316_s14] sm:$0x1] %v529_v20 }
 0x166   : > { %701 = shalt.err (!%p698_p5)
}
 0x167   : > { %631 = dma.vmem_to_hbm [thread:$0]  (%p820_p6), %s543_s15, 16, %s545_s16, %s532_s17  }
 0x168 PF: > { %p637_p7 = scmp.ge.s32.totalorder %s736_s29, 2  ;;  %s556_s25 = sand.u32 1, %s724_s26  }
 0x169   : > { %s557_s24 = scalar_lea.sflag [#allocation5], %s556_s25 }
 0x16a   : > { %p634_p9 = pnand %p637_p7, %p824_p8 }
 0x16c   : > { %p635_p10 = pneg %p634_p9 }
 0x16e   : > { %719 = dma.done.wait (%p635_p10), %s557_s24, 16  }
 0x16f   : > { %721 = vsyncadd (%p635_p10), %s557_s24, 4294967280  ;;  %p19_p11 = scmp.ge.s32.totalorder %s805_s8, 5   ;;  %s955_s26 = smov %s728_s27 }
 0x170   : > { %s956_s27 = smov %s732_s28  ;;  %s957_s28 = smov %s818_s11 }
 0x171   : > { %s958_s29 = smov %s805_s8  ;;  %21 = sbr.rel (!%p19_p11) target bundleno = 6 (0x6), region = 126 }
 0x176   :  { %562 = vsyncpa [#allocation5], 1 }
 0x177   :  { %564 = vsyncpa [#allocation5 + $0x1], 1 }

</bundles_post_ra>
